<compile_context>
chip_gen: v5e
topology: v5e:2x2
jax: 0.10.0
libtpu: 0.0.40
codegen_flags: <defaults>
</compile_context>

<pallas_src>
import functools

import jax
import jax.numpy as jnp
from jax.experimental import pallas as pl
from jax.experimental.pallas import tpu as pltpu

_LANES = 128
_MAX_BLOCK_ROWS = 2048          # 2048 * 128 * 4 B = 1 MiB per operand block


def _l1_loss_kernel(x_ref, y_ref, o_ref, acc_ref, *, inv_n):
    """x_ref, y_ref: (block_rows, 128) f32 tiles of the flattened operands.
       o_ref:        (1, 1) f32 output (mean absolute error).
       acc_ref:      (1, 1) f32 VMEM scratch accumulating the running sum."""
    step = pl.program_id(0)

    @pl.when(step == 0)
    def _():
        acc_ref[...] = jnp.zeros_like(acc_ref)

    diff = x_ref[...] - y_ref[...]
    acc_ref[...] += jnp.sum(jnp.abs(diff))

    @pl.when(step == pl.num_programs(0) - 1)
    def _():
        # single store of the finalized result
        o_ref[...] = acc_ref[...] * inv_n


def l1_loss(x, x_recon):
    """mean(|x - x_recon|) over all elements; matches nn.L1Loss() (reduction='mean')."""
    assert x.shape == x_recon.shape, (x.shape, x_recon.shape)
    n = int(x.size)

    xf = jnp.ravel(x).astype(jnp.float32)
    yf = jnp.ravel(x_recon).astype(jnp.float32)

    # lane-dense layout: (rows, 128); rows padded to a sublane multiple / block
    rows = -(-n // _LANES)
    if rows <= _MAX_BLOCK_ROWS:
        block_rows = -(-rows // 8) * 8            # multiple of 8 sublanes
    else:
        block_rows = _MAX_BLOCK_ROWS
    rows_padded = -(-rows // block_rows) * block_rows
    padded = rows_padded * _LANES

    # identical zero padding on both operands -> padded positions add 0 to the sum
    xf = jnp.pad(xf, (0, padded - n))
    yf = jnp.pad(yf, (0, padded - n))
    x2 = xf.reshape(rows_padded, _LANES)
    y2 = yf.reshape(rows_padded, _LANES)

    grid = rows_padded // block_rows
    kernel = functools.partial(_l1_loss_kernel, inv_n=1.0 / n)

    out = pl.pallas_call(
        kernel,
        out_shape=jax.ShapeDtypeStruct((1, 1), jnp.float32),
        grid=(grid,),
        in_specs=[
            pl.BlockSpec((block_rows, _LANES), lambda i: (i, 0)),
            pl.BlockSpec((block_rows, _LANES), lambda i: (i, 0)),
        ],
        # same output block for every grid step -> accumulator stays VMEM-resident
        out_specs=pl.BlockSpec((1, 1), lambda i: (0, 0)),
        scratch_shapes=[pltpu.VMEM((1, 1), jnp.float32)],
        compiler_params=pltpu.CompilerParams(
            dimension_semantics=("arbitrary",)),   # reduction axis
    )(x2, y2)

    return out[0, 0]


def con_loss_forward(x, x_recon):
    """ConLoss.forward(x, x_recon)."""
    return l1_loss(x, x_recon)


if __name__ == "__main__":
    # Small deterministic example: x / x_recon of shape (2, 4, 16, 16)
    key = jax.random.PRNGKey(0)
    kx, kr = jax.random.split(key)
    x = jax.random.normal(kx, (2, 4, 16, 16), jnp.float32)
    x_recon = jax.random.normal(kr, (2, 4, 16, 16), jnp.float32)

    loss_fn = jax.jit(con_loss_forward)
    loss = loss_fn(x, x_recon)
    jax.block_until_ready(loss)

    assert loss.shape == (), loss.shape
    assert loss.dtype == jnp.float32

    # correctness vs. plain-JAX reference (== torch nn.L1Loss semantics)
    ref = jnp.mean(jnp.abs(x - x_recon))
    assert jnp.allclose(loss, ref, rtol=1e-5, atol=1e-6), (float(loss), float(ref))

    print("KERNEL_OK")
</pallas_src>

<mosaic_0001>
module attributes {stable_mosaic.version = 11 : i64} {
  func.func @_l1_loss_kernel(%arg0: i32, %arg1: memref<16x128xf32, #tpu.memory_space<vmem>>, %arg2: memref<16x128xf32, #tpu.memory_space<vmem>>, %arg3: memref<1x1xf32, #tpu.memory_space<vmem>>, %arg4: memref<1x1xf32, #tpu.memory_space<vmem>>) attributes {dimension_semantics = [#tpu.dimension_semantics<arbitrary>], iteration_bounds = array<i64: 1>, scalar_prefetch = 0 : i64, scratch_operands = 1 : i64, tpu.core_type = #tpu.core_type<tc>, window_params = [{transform_indices = @transform_0, window_bounds = array<i64: 16, 128>}, {transform_indices = @transform_1, window_bounds = array<i64: 16, 128>}, {pipeline_mode = #tpu.pipeline_mode<synchronous>, transform_indices = @transform_2, window_bounds = array<i64: 1, 1>}]} {
    %c0_i32 = arith.constant 0 : i32
    %0 = arith.cmpi eq, %arg0, %c0_i32 : i32
    %1 = arith.extui %0 : i1 to i32
    %c0_i32_0 = arith.constant 0 : i32
    %2 = arith.cmpi ne, %1, %c0_i32_0 : i32
    scf.if %2 {
      %cst_10 = arith.constant 0.000000e+00 : f32
      %18 = vector.broadcast %cst_10 : f32 to vector<1x1xf32>
      %c0_11 = arith.constant 0 : index
      %c0_12 = arith.constant 0 : index
      %19 = vector.load %arg4[%c0_11, %c0_12] : memref<1x1xf32, #tpu.memory_space<vmem>>, vector<1x1xf32>
      tpu.vector_store %arg4[%c0_11, %c0_12], %18 {strides = array<i32>} : memref<1x1xf32, #tpu.memory_space<vmem>>, vector<1x1xf32>,
    } else {
    }
    %c0 = arith.constant 0 : index
    %c0_1 = arith.constant 0 : index
    %3 = vector.load %arg1[%c0, %c0_1] : memref<16x128xf32, #tpu.memory_space<vmem>>, vector<16x128xf32>
    %c0_2 = arith.constant 0 : index
    %c0_3 = arith.constant 0 : index
    %4 = vector.load %arg2[%c0_2, %c0_3] : memref<16x128xf32, #tpu.memory_space<vmem>>, vector<16x128xf32>
    %5 = arith.subf %3, %4 : vector<16x128xf32>
    %c0_4 = arith.constant 0 : index
    %c0_5 = arith.constant 0 : index
    %6 = vector.load %arg4[%c0_4, %c0_5] : memref<1x1xf32, #tpu.memory_space<vmem>>, vector<1x1xf32>
    %7 = math.absf %5 : vector<16x128xf32>
    %8 = vector.shape_cast %7 : vector<16x128xf32> to vector<1x16x128xf32>
    %cst = arith.constant dense<0.000000e+00> : vector<1xf32>
    %9 = vector.multi_reduction <add>, %8, %cst [1, 2] : vector<1x16x128xf32> to vector<1xf32>
    %10 = vector.shape_cast %9 : vector<1xf32> to vector<1x1x1xf32>
    %11 = vector.extract %10[0, 0, 0] : f32 from vector<1x1x1xf32>
    %12 = vector.broadcast %11 : f32 to vector<1x1xf32>
    %13 = arith.addf %6, %12 : vector<1x1xf32>
    %c0_6 = arith.constant 0 : index
    %c0_7 = arith.constant 0 : index
    %14 = vector.load %arg4[%c0_6, %c0_7] : memref<1x1xf32, #tpu.memory_space<vmem>>, vector<1x1xf32>
    tpu.vector_store %arg4[%c0_6, %c0_7], %13 {strides = array<i32>} : memref<1x1xf32, #tpu.memory_space<vmem>>, vector<1x1xf32>,
    %c0_i32_8 = arith.constant 0 : i32
    %15 = arith.cmpi eq, %arg0, %c0_i32_8 : i32
    %16 = arith.extui %15 : i1 to i32
    %c0_i32_9 = arith.constant 0 : i32
    %17 = arith.cmpi ne, %16, %c0_i32_9 : i32
    scf.if %17 {
      %c0_10 = arith.constant 0 : index
      %c0_11 = arith.constant 0 : index
      %18 = vector.load %arg4[%c0_10, %c0_11] : memref<1x1xf32, #tpu.memory_space<vmem>>, vector<1x1xf32>
      %cst_12 = arith.constant 4.8828125E-4 : f32
      %19 = vector.broadcast %cst_12 : f32 to vector<1x1xf32>
      %20 = arith.mulf %18, %19 : vector<1x1xf32>
      %c0_13 = arith.constant 0 : index
      %c0_14 = arith.constant 0 : index
      %21 = vector.load %arg3[%c0_13, %c0_14] : memref<1x1xf32, #tpu.memory_space<vmem>>, vector<1x1xf32>
      tpu.vector_store %arg3[%c0_13, %c0_14], %20 {strides = array<i32>} : memref<1x1xf32, #tpu.memory_space<vmem>>, vector<1x1xf32>,
    } else {
    }
    return
  }
  func.func @transform_0(%arg0: i32) -> (i32, i32) {
    %c0_i32 = arith.constant 0 : i32
    %c0_i32_0 = arith.constant 0 : i32
    return %arg0, %c0_i32 : i32, i32
  }
  func.func @transform_1(%arg0: i32) -> (i32, i32) {
    %c0_i32 = arith.constant 0 : i32
    %c0_i32_0 = arith.constant 0 : i32
    return %arg0, %c0_i32 : i32, i32
  }
  func.func @transform_2(%arg0: i32) -> (i32, i32) {
    %c0_i32 = arith.constant 0 : i32
    %c0_i32_0 = arith.constant 0 : i32
    %c0_i32_1 = arith.constant 0 : i32
    return %c0_i32, %c0_i32_0 : i32, i32
  }
}

</mosaic_0001>

<bundles_post_ra>
// kernel: con_loss_forward.1
= control target key start
LH: loop header
LB: loop body
LE: loop exit
PB: predicated region body
PF: predicated region fallthrough
CT: control target
= control target key end

     0   :  { %s128_s0 = inlined_call_operand.vmem [shape: f32[16,128], index: 0, kind: input, shape index: {}]   ;;  %s129_s1 = inlined_call_operand.vmem [shape: f32[16,128], index: 1, kind: input, shape index: {}]   ;;  %s130_s2 = inlined_call_operand.hbm [shape: f32[1,1], index: 2, kind: output, shape index: {}]  }
   0x1   :  { %v18_v0 = vld [vmem:[%s128_s0] sm:$0xff]  ;;  %v19_v1 = vld [vmem:[%s128_s0 + $0x8] sm:$0xff] }
   0x2   :  { %v20_v2 = vld [vmem:[%s129_s1] sm:$0xff]  ;;  %v21_v3 = vld [vmem:[%s129_s1 + $0x8] sm:$0xff] }
   0x3   :  { %v22_v4 = vsub.f32 %v18_v0, %v20_v2 }
   0x4   :  { %7 = vsyncpa [#allocation4], 0  ;;  %v23_v5 = vsub.f32 %v19_v1, %v21_v3  ;;  %vm16_vm0 = vcmask 0   ;;  %v93_v9 = vmov 0.0   ;;  %s94_s1 = smov [#allocation3]   ;;  %s54_s20 = sshll.u32 %s130_s2, 4  ;;  %s55_s20 = int_to_ptr.hbm [resolvable:$true] %s54_s20 }
   0x5   :  { %v25_v6 = vand.u32 2147483647, %v22_v4  ;;  %17 = vst.msk [vmem:[#allocation2] sm:$0x1] %vm16_vm0, %v93_v9  ;;  %s52_s17 = sshll.u32 %s94_s1, 4  ;;  %s53_s17 = int_to_ptr.vmem [resolvable:$true] %s52_s17 }
   0x6   :  { %v26_v7 = vand.u32 2147483647, %v23_v5 }
   0x8   :  { %v27_v8 = vadd.f32 %v26_v7, %v25_v6 }
   0xa   :  { %28 = vadd.xlane.f32.xlu0 %v27_v8 }
   0xc   :  { %v24_v17 = vld [vmem:[#allocation2] sm:$0x1] }
  0x7d   :  { %v29_v10 = vpop.xlane.xlu0 %28 }
  0x7e   :  { %v30_v11 = vrot.slane %v29_v10, 4 }
  0x80   :  { %v31_v12 = vadd.f32 %v30_v11, %v29_v10 }
  0x82   :  { %v32_v13 = vrot.slane %v31_v12, 2 }
  0x84   :  { %v33_v14 = vadd.f32 %v32_v13, %v31_v12 }
  0x86   :  { %v34_v15 = vrot.slane %v33_v14, 1 }
  0x88   :  { %v35_v16 = vadd.f32 %v34_v15, %v33_v14 }
  0x8a   :  { %63 = vpush %v35_v16 }
  0xbb   :  { %s64_s0 = spop %63 }
  0xbc   :  { %v37_v18 = vstv %s64_s0 }
  0xbd   :  { %v38_v19 = vadd.f32 %v37_v18, %v24_v17 }
  0xbf   :  { %40 = vst.msk [vmem:[#allocation2] sm:$0x1] %vm16_vm0, %v38_v19 }
  0xc6   :  { %v44_v20 = vld [vmem:[#allocation2] sm:$0x1] }
  0xc7   :  { %v45_v21 = vmul.f32 0.00048828125, %v44_v20 }
  0xc9   :  { %46 = vst.msk [vmem:[#allocation3] sm:$0x1] %vm16_vm0, %v45_v21 }
  0xca   :  { %57 = dma.vmem_to_hbm [thread:$0]  %s53_s17, 16, %s55_s20, [#allocation4]  }
  0xcb   :  { %91 = dma.done.wait [#allocation4], 16  }
  0xcc   :  { %92 = vsyncadd [#allocation4], 4294967280 }
  0xcd   :  { %62 = vsyncpa [#allocation4], 1 }

</bundles_post_ra>
